<compile_context>
chip_gen: v5e
topology: v5e:2x2
jax: 0.10.0
libtpu: 0.0.40
codegen_flags: <defaults>
</compile_context>

<pallas_src>
import jax
import jax.numpy as jnp
from jax.experimental import pallas as pl
from jax.experimental.pallas import tpu as pltpu

EPS = 1e-5


def aux_kernel(invt_ref, x_ref, g_ref, be_ref, w_ref, b_ref, o_ref):
    inv_t = invt_ref[0]                                       # SMEM scalar 1/T
    x = x_ref[...]                                            # (N, F) f32

    # BatchNorm1d (training mode): batch mean / biased variance per feature.
    mean = jnp.mean(x, axis=0, keepdims=True)                 # (1, F)
    var = jnp.mean(jnp.square(x - mean), axis=0, keepdims=True)

    # Fused per-feature affine coefficients with 1/T folded in: BN(x)/T = x*a + c
    a0 = g_ref[...] * jax.lax.rsqrt(var + EPS)                # (1, F)
    a = a0 * inv_t
    c = (be_ref[...] - mean * a0) * inv_t
    y = x * a + c                                             # (N, F) == BN(x)/T

    # Linear on the MXU; weight kept in native torch (M, F) layout,
    # contraction on the last dim of both operands (trans_b matmul).
    acc = jax.lax.dot_general(
        y, w_ref[...], (((1,), (1,)), ((), ())),
        preferred_element_type=jnp.float32)                   # (N, M)
    o_ref[...] = (acc + b_ref[...] * inv_t).astype(o_ref.dtype)


@jax.jit
def aux_module_forward(x, gamma, beta, w, b, T):
    """x: (N, F) f32.  w: (M, F) as in torch Linear.  Returns FC(BN(x))/T, (N, M)."""
    N, F = x.shape
    M = w.shape[0]

    inv_t = (1.0 / jnp.asarray(T, jnp.float32)).reshape(1)    # scalar-prefetch arg
    gamma2 = gamma.reshape(1, F)
    beta2 = beta.reshape(1, F)
    b2 = b.reshape(1, M)

    cost = pl.CostEstimate(
        flops=2 * N * F * M + 8 * N * F,
        transcendentals=F,
        bytes_accessed=4 * (N * F + M * F + 2 * F + M + N * M))

    return pl.pallas_call(
        aux_kernel,
        out_shape=jax.ShapeDtypeStruct((N, M), x.dtype),
        grid_spec=pltpu.PrefetchScalarGridSpec(
            num_scalar_prefetch=1,                 # inv_t -> SMEM
            grid=(1,),
            in_specs=[
                pl.BlockSpec((N, F), lambda i, invt: (0, 0)),   # x (full batch)
                pl.BlockSpec((1, F), lambda i, invt: (0, 0)),   # BN gamma
                pl.BlockSpec((1, F), lambda i, invt: (0, 0)),   # BN beta
                pl.BlockSpec((M, F), lambda i, invt: (0, 0)),   # W, native (M, F)
                pl.BlockSpec((1, M), lambda i, invt: (0, 0)),   # FC bias
            ],
            out_specs=pl.BlockSpec((N, M), lambda i, invt: (0, 0)),
        ),
        compiler_params=pltpu.CompilerParams(
            dimension_semantics=("arbitrary",)),
        cost_estimate=cost,
    )(inv_t, x, gamma2, beta2, w, b2)


def aux_module_ref(x, gamma, beta, w, b, T):
    mean = jnp.mean(x, axis=0, keepdims=True)
    var = jnp.mean(jnp.square(x - mean), axis=0, keepdims=True)
    y = (x - mean) / jnp.sqrt(var + EPS) * gamma[None, :] + beta[None, :]
    return (y @ w.T + b[None, :]) / T


if __name__ == "__main__":
    N, F, M, T = 8, 2048, 32, 4.0   # F=2048 is fixed by the module definition

    key = jax.random.PRNGKey(0)
    kx, kw, kb, kg, kbe = jax.random.split(key, 5)

    x = jax.random.normal(kx, (N, F), dtype=jnp.float32)

    # Deterministic synthetic parameters (no checkpoint load).
    gamma = 1.0 + 0.1 * jax.random.normal(kg, (F,), dtype=jnp.float32)   # BN weight
    beta = 0.1 * jax.random.normal(kbe, (F,), dtype=jnp.float32)         # BN bias
    w = jax.random.normal(kw, (M, F), dtype=jnp.float32) * 0.02          # FC weight
    b = jax.random.normal(kb, (M,), dtype=jnp.float32) * 0.02            # FC bias

    out = jax.block_until_ready(aux_module_forward(x, gamma, beta, w, b, T))

    ref = aux_module_ref(x, gamma, beta, w, b, T)
    assert out.shape == (N, M)
    assert jnp.allclose(out, ref, atol=1e-4, rtol=1e-4), (
        float(jnp.max(jnp.abs(out - ref))))

    print("KERNEL_OK")
</pallas_src>

<mosaic_0001>
module attributes {stable_mosaic.version = 11 : i64} {
  func.func @aux_kernel(%arg0: i32, %arg1: memref<1xf32, #tpu.memory_space<smem>>, %arg2: memref<8x2048xf32, #tpu.memory_space<vmem>>, %arg3: memref<1x2048xf32, #tpu.memory_space<vmem>>, %arg4: memref<1x2048xf32, #tpu.memory_space<vmem>>, %arg5: memref<32x2048xf32, #tpu.memory_space<vmem>>, %arg6: memref<1x32xf32, #tpu.memory_space<vmem>>, %arg7: memref<8x32xf32, #tpu.memory_space<vmem>>) attributes {dimension_semantics = [#tpu.dimension_semantics<arbitrary>], iteration_bounds = array<i64: 1>, scalar_prefetch = 1 : i64, scratch_operands = 0 : i64, tpu.core_type = #tpu.core_type<tc>, window_params = [{pipeline_mode = #tpu.pipeline_mode<synchronous>, transform_indices = @transform_0, window_bounds = array<i64: 8, 2048>}, {pipeline_mode = #tpu.pipeline_mode<synchronous>, transform_indices = @transform_1, window_bounds = array<i64: 1, 2048>}, {pipeline_mode = #tpu.pipeline_mode<synchronous>, transform_indices = @transform_2, window_bounds = array<i64: 1, 2048>}, {pipeline_mode = #tpu.pipeline_mode<synchronous>, transform_indices = @transform_3, window_bounds = array<i64: 32, 2048>}, {pipeline_mode = #tpu.pipeline_mode<synchronous>, transform_indices = @transform_4, window_bounds = array<i64: 1, 32>}, {pipeline_mode = #tpu.pipeline_mode<synchronous>, transform_indices = @transform_5, window_bounds = array<i64: 8, 32>}]} {
    %c0 = arith.constant 0 : index
    %0 = memref.load %arg1[%c0] : memref<1xf32, #tpu.memory_space<smem>>
    %c0_0 = arith.constant 0 : index
    %c0_1 = arith.constant 0 : index
    %1 = vector.load %arg2[%c0_0, %c0_1] : memref<8x2048xf32, #tpu.memory_space<vmem>>, vector<8x2048xf32>
    %cst = arith.constant dense<0.000000e+00> : vector<2048xf32>
    %2 = vector.multi_reduction <add>, %1, %cst [0] : vector<8x2048xf32> to vector<2048xf32>
    %3 = vector.shape_cast %2 : vector<2048xf32> to vector<1x2048xf32>
    %cst_2 = arith.constant 8.000000e+00 : f32
    %4 = vector.broadcast %cst_2 : f32 to vector<1x2048xf32>
    %5 = arith.divf %3, %4 : vector<1x2048xf32>
    %6 = vector.broadcast %5 : vector<1x2048xf32> to vector<8x2048xf32>
    %7 = arith.subf %1, %6 : vector<8x2048xf32>
    %8 = arith.mulf %7, %7 : vector<8x2048xf32>
    %cst_3 = arith.constant dense<0.000000e+00> : vector<2048xf32>
    %9 = vector.multi_reduction <add>, %8, %cst_3 [0] : vector<8x2048xf32> to vector<2048xf32>
    %10 = vector.shape_cast %9 : vector<2048xf32> to vector<1x2048xf32>
    %cst_4 = arith.constant 8.000000e+00 : f32
    %11 = vector.broadcast %cst_4 : f32 to vector<1x2048xf32>
    %12 = arith.divf %10, %11 : vector<1x2048xf32>
    %c0_5 = arith.constant 0 : index
    %c0_6 = arith.constant 0 : index
    %13 = vector.load %arg3[%c0_5, %c0_6] : memref<1x2048xf32, #tpu.memory_space<vmem>>, vector<1x2048xf32>
    %cst_7 = arith.constant 9.99999974E-6 : f32
    %14 = vector.broadcast %cst_7 : f32 to vector<1x2048xf32>
    %15 = arith.addf %12, %14 : vector<1x2048xf32>
    %16 = math.rsqrt %15 : vector<1x2048xf32>
    %17 = arith.mulf %13, %16 : vector<1x2048xf32>
    %18 = vector.broadcast %0 : f32 to vector<1x2048xf32>
    %19 = arith.mulf %17, %18 : vector<1x2048xf32>
    %c0_8 = arith.constant 0 : index
    %c0_9 = arith.constant 0 : index
    %20 = vector.load %arg4[%c0_8, %c0_9] : memref<1x2048xf32, #tpu.memory_space<vmem>>, vector<1x2048xf32>
    %21 = arith.mulf %5, %17 : vector<1x2048xf32>
    %22 = arith.subf %20, %21 : vector<1x2048xf32>
    %23 = vector.broadcast %0 : f32 to vector<1x2048xf32>
    %24 = arith.mulf %22, %23 : vector<1x2048xf32>
    %25 = vector.broadcast %19 : vector<1x2048xf32> to vector<8x2048xf32>
    %26 = arith.mulf %1, %25 : vector<8x2048xf32>
    %27 = vector.broadcast %24 : vector<1x2048xf32> to vector<8x2048xf32>
    %28 = arith.addf %26, %27 : vector<8x2048xf32>
    %c0_10 = arith.constant 0 : index
    %c0_11 = arith.constant 0 : index
    %29 = vector.load %arg5[%c0_10, %c0_11] : memref<32x2048xf32, #tpu.memory_space<vmem>>, vector<32x2048xf32>
    %cst_12 = arith.constant dense<0.000000e+00> : vector<8x32xf32>
    %30 = tpu.matmul %28, %29, %cst_12 {dimension_numbers = #tpu.dot_dimension_numbers<[1], [1], [0], [0], [0, 0, 1, 0], [], []>} : vector<8x2048xf32>, vector<32x2048xf32>, vector<8x32xf32> -> vector<8x32xf32>
    %c0_13 = arith.constant 0 : index
    %c0_14 = arith.constant 0 : index
    %31 = vector.load %arg6[%c0_13, %c0_14] : memref<1x32xf32, #tpu.memory_space<vmem>>, vector<1x32xf32>
    %32 = vector.broadcast %0 : f32 to vector<1x32xf32>
    %33 = arith.mulf %31, %32 : vector<1x32xf32>
    %34 = vector.broadcast %33 : vector<1x32xf32> to vector<8x32xf32>
    %35 = arith.addf %30, %34 : vector<8x32xf32>
    %c0_15 = arith.constant 0 : index
    %c0_16 = arith.constant 0 : index
    %36 = vector.load %arg7[%c0_15, %c0_16] : memref<8x32xf32, #tpu.memory_space<vmem>>, vector<8x32xf32>
    tpu.vector_store %arg7[%c0_15, %c0_16], %35 {strides = array<i32>} : memref<8x32xf32, #tpu.memory_space<vmem>>, vector<8x32xf32>,
    return
  }
  func.func @transform_0(%arg0: i32, %arg1: memref<1xf32, #tpu.memory_space<smem>>) -> (i32, i32) {
    %c0_i32 = arith.constant 0 : i32
    %c0_i32_0 = arith.constant 0 : i32
    %c0_i32_1 = arith.constant 0 : i32
    return %c0_i32, %c0_i32_0 : i32, i32
  }
  func.func @transform_1(%arg0: i32, %arg1: memref<1xf32, #tpu.memory_space<smem>>) -> (i32, i32) {
    %c0_i32 = arith.constant 0 : i32
    %c0_i32_0 = arith.constant 0 : i32
    %c0_i32_1 = arith.constant 0 : i32
    return %c0_i32, %c0_i32_0 : i32, i32
  }
  func.func @transform_2(%arg0: i32, %arg1: memref<1xf32, #tpu.memory_space<smem>>) -> (i32, i32) {
    %c0_i32 = arith.constant 0 : i32
    %c0_i32_0 = arith.constant 0 : i32
    %c0_i32_1 = arith.constant 0 : i32
    return %c0_i32, %c0_i32_0 : i32, i32
  }
  func.func @transform_3(%arg0: i32, %arg1: memref<1xf32, #tpu.memory_space<smem>>) -> (i32, i32) {
    %c0_i32 = arith.constant 0 : i32
    %c0_i32_0 = arith.constant 0 : i32
    %c0_i32_1 = arith.constant 0 : i32
    return %c0_i32, %c0_i32_0 : i32, i32
  }
  func.func @transform_4(%arg0: i32, %arg1: memref<1xf32, #tpu.memory_space<smem>>) -> (i32, i32) {
    %c0_i32 = arith.constant 0 : i32
    %c0_i32_0 = arith.constant 0 : i32
    %c0_i32_1 = arith.constant 0 : i32
    return %c0_i32, %c0_i32_0 : i32, i32
  }
  func.func @transform_5(%arg0: i32, %arg1: memref<1xf32, #tpu.memory_space<smem>>) -> (i32, i32) {
    %c0_i32 = arith.constant 0 : i32
    %c0_i32_0 = arith.constant 0 : i32
    %c0_i32_1 = arith.constant 0 : i32
    return %c0_i32, %c0_i32_0 : i32, i32
  }
}

</mosaic_0001>

<bundles_post_ra>
// kernel: aux_module_forward.1
= control target key start
LH: loop header
LB: loop body
LE: loop exit
PB: predicated region body
PF: predicated region fallthrough
CT: control target
= control target key end

     0   :  { %12 = vsyncpa [#allocation5], 0  ;;  %s2035_s0 = inlined_call_operand.<no memory space> [shape: f32[1], index: 0, kind: input, shape index: {}]   ;;  %s2036_s1 = inlined_call_operand.hbm [shape: f32[8,2048], index: 1, kind: input, shape index: {}]   ;;  %s2037_s2 = inlined_call_operand.hbm [shape: f32[1,2048], index: 2, kind: input, shape index: {}]   ;;  %s2038_s3 = inlined_call_operand.hbm [shape: f32[1,2048], index: 3, kind: input, shape index: {}]   ;;  %s2039_s4 = inlined_call_operand.hbm [shape: f32[32,2048], index: 4, kind: input, shape index: {}]   ;;  %s2040_s5 = inlined_call_operand.vmem [shape: f32[1,32], index: 5, kind: input, shape index: {}]   ;;  %s2041_s6 = inlined_call_operand.hbm [shape: f32[8,32], index: 6, kind: output, shape index: {}]  }
   0x1   :  { %13 = vsyncpa [#allocation8], 0 }
   0x2   :  { %14 = vsyncpa [#allocation11], 0  ;;  %s32_s23 = sshll.u32 %s2037_s2, 4  ;;  %s33_s23 = int_to_ptr.hbm [resolvable:$true] %s32_s23 }
   0x3   :  { %15 = vsyncpa [#allocation6], 0  ;;  %s1384_s24 = smov [#allocation7]   ;;  %s21_s28 = sshll.u32 %s2036_s1, 4  ;;  %s22_s28 = int_to_ptr.hbm [resolvable:$true] %s21_s28 }
   0x4   :  { %s34_s25 = sshll.u32 %s1384_s24, 4  ;;  %s1385_s29 = smov [#allocation4]   ;;  %s35_s25 = int_to_ptr.vmem [resolvable:$true] %s34_s25 }
   0x5   :  { %37 = dma.hbm_to_vmem [thread:$0]  %s33_s23, 256, %s35_s25, [#allocation8]  }
   0x6   :  { %s23_s30 = sshll.u32 %s1385_s29, 4  ;;  %s43_s9 = sshll.u32 %s2038_s3, 4  ;;  %s24_s30 = int_to_ptr.vmem [resolvable:$true] %s23_s30  ;;  %s44_s9 = int_to_ptr.hbm [resolvable:$true] %s43_s9 }
   0x7   :  { %26 = dma.hbm_to_vmem [thread:$0]  %s22_s28, 2048, %s24_s30, [#allocation5]  }
   0x8   :  { %s53_s11 = sshll.u32 %s2039_s4, 4  ;;  %s1386_s12 = smov [#allocation9]   ;;  %s54_s11 = int_to_ptr.hbm [resolvable:$true] %s53_s11 }
   0x9   :  { %s45_s13 = sshll.u32 %s1386_s12, 4  ;;  %s1387_s1 = smov [#allocation10]   ;;  %s46_s13 = int_to_ptr.vmem [resolvable:$true] %s45_s13 }
   0xa   :  { %48 = dma.hbm_to_vmem [thread:$0]  %s44_s9, 256, %s46_s13, [#allocation8]  }
   0xb   :  { %s55_s14 = sshll.u32 %s1387_s1, 4  ;;  %s1388_s15 = smov 2048   ;;  %s56_s14 = int_to_ptr.vmem [resolvable:$true] %s55_s14 }
   0xc   :  { %s1389_s16 = smov 128  }
   0xd   :  { %61 = dma.hbm_to_vmem [thread:$0]  %s54_s11, 8192, %s56_s14, [#allocation11], %s1388_s15, %s1388_s15, %s1389_s16  }
   0xe   :  { %1376 = dma.done.wait [#allocation5], 2048  }
   0xf   :  { %1377 = vsyncadd [#allocation5], 4294965248 }
  0x10   :  { %1378 = dma.done.wait [#allocation8], 512  }
  0x11   :  { %1379 = vsyncadd [#allocation8], 4294966784 }
  0x12   :  { %1380 = dma.done.wait [#allocation11], 8192  }
  0x13   :  { %1381 = vsyncadd [#allocation11], 4294959104  ;;  %v846_v0 = vld [vmem:[#allocation10 + $0x180] sm:$0xff]  ;;  %v848_v1 = vld [vmem:[#allocation10 + $0x190] sm:$0xff]  ;;  %v1390_v4 = vmov 8.0   ;;  %s1196_s21 = sshll.u32 %s2041_s6, 4  ;;  %s1197_s21 = int_to_ptr.hbm [resolvable:$true] %s1196_s21 }
  0x14   :  { %v847_v2 = vld [vmem:[#allocation10 + $0x188] sm:$0xff]  ;;  %879 = vmatpush.xpose.msra.mxu0 %v846_v0  ;;  %919 = vmatpush.xpose.msra.mxu2 %v848_v1  ;;  %v849_v3 = vld [vmem:[#allocation10 + $0x198] sm:$0xff]  ;;  %1216 = vrcp.f32 %v1390_v4  ;;  %v830_v5 = vld [vmem:[#allocation10 + $0x100] sm:$0xff] }
  0x15   :  { %899 = vmatpush.xpose.msra.mxu1 %v847_v2  ;;  %939 = vmatpush.xpose.msra.mxu3 %v849_v3  ;;  %v832_v6 = vld [vmem:[#allocation10 + $0x110] sm:$0xff]  ;;  %v831_v7 = vld [vmem:[#allocation10 + $0x108] sm:$0xff]  ;;  %v833_v8 = vld [vmem:[#allocation10 + $0x118] sm:$0xff] }
  0x16   :  { %v814_v9 = vld [vmem:[#allocation10 + $0x80] sm:$0xff]  ;;  %v816_v10 = vld [vmem:[#allocation10 + $0x90] sm:$0xff]  ;;  %v815_v12 = vld [vmem:[#allocation10 + $0x88] sm:$0xff] }
  0x17   :  { %v817_v13 = vld [vmem:[#allocation10 + $0x98] sm:$0xff]  ;;  %v798_v14 = vld [vmem:[#allocation10] sm:$0xff]  ;;  %v800_v15 = vld [vmem:[#allocation10 + $0x10] sm:$0xff] }
  0x18   :  { %880 = vmatpush.xpose.msra.mxu0 %v830_v5  ;;  %920 = vmatpush.xpose.msra.mxu2 %v832_v6  ;;  %v850_v16 = vld [vmem:[#allocation10 + $0x1a0] sm:$0xff]  ;;  %v852_v17 = vld [vmem:[#allocation10 + $0x1b0] sm:$0xff]  ;;  %v799_v18 = vld [vmem:[#allocation10 + $0x8] sm:$0xff] }
  0x19   :  { %900 = vmatpush.xpose.msra.mxu1 %v831_v7  ;;  %940 = vmatpush.xpose.msra.mxu3 %v833_v8  ;;  %v1441_v19 = vld [vmem:[#allocation4] sm:$0xff]  ;;  %v1443_v20 = vld [vmem:[#allocation4 + $0x8] sm:$0xff]  ;;  %v1445_v21 = vld [vmem:[#allocation4 + $0x10] sm:$0xff] }
  0x1a   :  { %v1439_v11 = vpop.eup %1216  ;;  %v1448_v23 = vld [vmem:[#allocation4 + $0x18] sm:$0xff]  ;;  %v1450_v24 = vld [vmem:[#allocation4 + $0x20] sm:$0xff]  ;;  %v1452_v25 = vld [vmem:[#allocation4 + $0x28] sm:$0xff]  ;;  %v97_v26 = vrot.slane %v1441_v19, 4  ;;  %v103_v27 = vrot.slane %v1443_v20, 4  ;;  %v109_v28 = vrot.slane %v1445_v21, 4 }
  0x1b   :  { %v194_v22 = vmul.f32 8.0, %v1439_v11  ;;  %2048 = vst [vmem:[#allocation17_spill] sm:$0xff] %v1450_v24  ;;  %v801_v29 = vld [vmem:[#allocation10 + $0x18] sm:$0xff]  ;;  %v1457_v30 = vld [vmem:[#allocation4 + $0x30] sm:$0xff]  ;;  %v115_v32 = vrot.slane %v1448_v23, 4  ;;  %v121_v33 = vrot.slane %v1450_v24, 4  ;;  %vm198_vm0 = vweird.f32 %v1439_v11 }
  0x1c   :  { %881 = vmatpush.xpose.msra.mxu0 %v814_v9  ;;  %921 = vmatpush.xpose.msra.mxu2 %v816_v10  ;;  %2049 = vst [vmem:[#allocation18_spill] sm:$0xff] %v1452_v25  ;;  %v1459_v31 = vld [vmem:[#allocation4 + $0x38] sm:$0xff]  ;;  %v127_v34 = vrot.slane %v1452_v25, 4  ;;  %v851_v35 = vld [vmem:[#allocation10 + $0x1a8] sm:$0xff]  ;;  %v98_v37 = vadd.f32 %v97_v26, %v1441_v19  ;;  %v104_v38 = vadd.f32 %v103_v27, %v1443_v20  ;;  %v133_v40 = vrot.slane %v1457_v30, 4  ;;  %v834_v45 = vld [vmem:[#allocation10 + $0x120] sm:$0xff] }
  0x1d   :  { %901 = vmatpush.xpose.msra.mxu1 %v815_v12  ;;  %941 = vmatpush.xpose.msra.mxu3 %v817_v13  ;;  %2050 = vst [vmem:[#allocation19_spill] sm:$0xff] %v1459_v31  ;;  %v853_v36 = vld [vmem:[#allocation10 + $0x1b8] sm:$0xff]  ;;  %v110_v39 = vadd.f32 %v109_v28, %v1445_v21  ;;  %v116_v41 = vadd.f32 %v115_v32, %v1448_v23  ;;  %v139_v44 = vrot.slane %v1459_v31, 4  ;;  %v836_v46 = vld [vmem:[#allocation10 + $0x130] sm:$0xff]  ;;  %v195_v52 = vsub.f32 1.0, %v194_v22  ;;  %v835_v53 = vld [vmem:[#allocation10 + $0x128] sm:$0xff] }
  0x1e   :  { %v122_v42 = vadd.f32 %v121_v33, %v1450_v24  ;;  %v128_v43 = vadd.f32 %v127_v34, %v1452_v25  ;;  %v99_v47 = vrot.slane %v98_v37, 2  ;;  %v134_v48 = vadd.f32 %v133_v40, %v1457_v30  ;;  %v837_v54 = vld [vmem:[#allocation10 + $0x138] sm:$0xff]  ;;  %v818_v60 = vld [vmem:[#allocation10 + $0xa0] sm:$0xff]  ;;  %v820_v61 = vld [vmem:[#allocation10 + $0xb0] sm:$0xff] }
  0x1f   :  { %v105_v49 = vrot.slane %v104_v38, 2  ;;  %v111_v50 = vrot.slane %v110_v39, 2  ;;  %v140_v51 = vadd.f32 %v139_v44, %v1459_v31  ;;  %v117_v55 = vrot.slane %v116_v41, 2  ;;  %v819_v2 = vld [vmem:[#allocation10 + $0xa8] sm:$0xff]  ;;  %v821_v3 = vld [vmem:[#allocation10 + $0xb8] sm:$0xff]  ;;  %v802_v9 = vld [vmem:[#allocation10 + $0x20] sm:$0xff] }
  0x20   :  { %882 = vmatpush.xpose.msra.mxu0 %v798_v14  ;;  %922 = vmatpush.xpose.msra.mxu2 %v800_v15  ;;  %v123_v56 = vrot.slane %v122_v42, 2  ;;  %v129_v57 = vrot.slane %v128_v43, 2  ;;  %v135_v58 = vrot.slane %v134_v48, 2  ;;  %v100_v62 = vadd.f32 %v99_v47, %v98_v37  ;;  %v804_v10 = vld [vmem:[#allocation10 + $0x30] sm:$0xff] }
  0x21   :  { %902 = vmatpush.xpose.msra.mxu1 %v799_v18  ;;  %942 = vmatpush.xpose.msra.mxu3 %v801_v29  ;;  %v141_v59 = vrot.slane %v140_v51, 2  ;;  %v106_v63 = vadd.f32 %v105_v49, %v104_v38  ;;  %v112_v0 = vadd.f32 %v111_v50, %v110_v39  ;;  %v196_v1 = vmul.f32 %v1439_v11, %v195_v52 }
  0x22   :  { %v118_v4 = vadd.f32 %v117_v55, %v116_v41  ;;  %v124_v5 = vadd.f32 %v123_v56, %v122_v42  ;;  %v130_v6 = vadd.f32 %v129_v57, %v128_v43  ;;  %v136_v7 = vadd.f32 %v135_v58, %v134_v48  ;;  %v1524_v55 = vld [vmem:[#allocation4 + $0x60] sm:$0xff]  ;;  %v1526_v57 = vld [vmem:[#allocation4 + $0x68] sm:$0xff] }
  0x23   :  { %v142_v8 = vadd.f32 %v141_v59, %v140_v51  ;;  %v101_v12 = vrot.slane %v100_v62, 1  ;;  %v107_v13 = vrot.slane %v106_v63, 1  ;;  %v113_v14 = vrot.slane %v112_v0, 1 }
  0x24   :  { %959 = vmatpush.xpose.msrb.mxu0 %v850_v16  ;;  %999 = vmatpush.xpose.msrb.mxu2 %v852_v17  ;;  %v197_v15 = vadd.f32 %v1439_v11, %v196_v1  ;;  %v119_v16 = vrot.slane %v118_v4, 1  ;;  %v125_v17 = vrot.slane %v124_v5, 1  ;;  %v131_v18 = vrot.slane %v130_v6, 1 }
  0x25   :  { %979 = vmatpush.xpose.msrb.mxu1 %v851_v35  ;;  %1019 = vmatpush.xpose.msrb.mxu3 %v853_v36  ;;  %v137_v22 = vrot.slane %v136_v7, 1  ;;  %v143_v26 = vrot.slane %v142_v8, 1  ;;  %v102_v27 = vadd.f32 %v101_v12, %v100_v62  ;;  %v108_v28 = vadd.f32 %v107_v13, %v106_v63 }
  0x26   :  { %v114_v29 = vadd.f32 %v113_v14, %v112_v0  ;;  %v1478_v32 = vsel %vm198_vm0, %v1439_v11, %v197_v15  ;;  %v120_v33 = vadd.f32 %v119_v16, %v118_v4  ;;  %v126_v34 = vadd.f32 %v125_v17, %v124_v5  ;;  %v1528_v0 = vld [vmem:[#allocation4 + $0x70] sm:$0xff]  ;;  %v1533_v5 = vld [vmem:[#allocation4 + $0x78] sm:$0xff] }
  0x27   :  { %v132_v35 = vadd.f32 %v131_v18, %v130_v6  ;;  %v138_v36 = vadd.f32 %v137_v22, %v136_v7  ;;  %v144_v37 = vadd.f32 %v143_v26, %v142_v8  ;;  %v1481_v38 = vmul.f32 %v1478_v32, %v102_v27 }
  0x28   :  { %960 = vmatpush.xpose.msrb.mxu0 %v834_v45  ;;  %1000 = vmatpush.xpose.msrb.mxu2 %v836_v46  ;;  %v1484_v39 = vmul.f32 %v1478_v32, %v108_v28  ;;  %v1487_v40 = vmul.f32 %v1478_v32, %v114_v29  ;;  %v1490_v41 = vmul.f32 %v1478_v32, %v120_v33  ;;  %v175_v6 = vrot.slane %v1526_v57, 4 }
  0x29   :  { %980 = vmatpush.xpose.msrb.mxu1 %v835_v53  ;;  %1020 = vmatpush.xpose.msrb.mxu3 %v837_v54  ;;  %v1493_v11 = vmul.f32 %v1478_v32, %v126_v34  ;;  %v1496_v42 = vmul.f32 %v1478_v32, %v132_v35  ;;  %v1499_v43 = vmul.f32 %v1478_v32, %v138_v36  ;;  %v1520_v53 = vld [vmem:[#allocation4 + $0x40] sm:$0xff]  ;;  %v1522_v54 = vld [vmem:[#allocation4 + $0x48] sm:$0xff]  ;;  %v181_v15 = vrot.slane %v1528_v0, 4 }
  0x2a   :  { %v1502_v44 = vmul.f32 %v1478_v32, %v144_v37  ;;  %v216_v45 = vsub.f32 %v1441_v19, %v1481_v38  ;;  %v217_v46 = vsub.f32 %v1443_v20, %v1484_v39  ;;  %v218_v47 = vsub.f32 %v1445_v21, %v1487_v40 }
  0x2b   :  { %v219_v48 = vsub.f32 %v1448_v23, %v1490_v41  ;;  %v220_v49 = vsub.f32 %v1450_v24, %v1493_v11  ;;  %v221_v50 = vsub.f32 %v1452_v25, %v1496_v42  ;;  %v222_v51 = vsub.f32 %v1457_v30, %v1499_v43 }
  0x2c   :  { %961 = vmatpush.xpose.msrb.mxu0 %v818_v60  ;;  %1001 = vmatpush.xpose.msrb.mxu2 %v820_v61  ;;  %v223_v52 = vsub.f32 %v1459_v31, %v1502_v44  ;;  %v232_v56 = vmul.f32 %v216_v45, %v216_v45  ;;  %v233_v58 = vmul.f32 %v217_v46, %v217_v46  ;;  %v145_v1 = vrot.slane %v1520_v53, 4 }
  0x2d   :  { %981 = vmatpush.xpose.msrb.mxu1 %v819_v2  ;;  %1021 = vmatpush.xpose.msrb.mxu3 %v821_v3  ;;  %v234_v59 = vmul.f32 %v218_v47, %v218_v47  ;;  %v235_v60 = vmul.f32 %v219_v48, %v219_v48  ;;  %v236_v61 = vmul.f32 %v220_v49, %v220_v49  ;;  %v151_v2 = vrot.slane %v1522_v54, 4 }
  0x2e   :  { %v237_v62 = vmul.f32 %v221_v50, %v221_v50  ;;  %v238_v63 = vmul.f32 %v222_v51, %v222_v51  ;;  %v169_v3 = vrot.slane %v1524_v55, 4  ;;  %v239_v4 = vmul.f32 %v223_v52, %v223_v52 }
  0x2f   :  { %v248_v7 = vrot.slane %v232_v56, 4  ;;  %v254_v8 = vrot.slane %v233_v58, 4  ;;  %v272_v12 = vrot.slane %v236_v61, 4  ;;  %v187_v22 = vrot.slane %v1533_v5, 4 }
  0x30   :  { %962 = vmatpush.xpose.msrb.mxu0 %v802_v9  ;;  %1002 = vmatpush.xpose.msrb.mxu2 %v804_v10  ;;  %v260_v9 = vrot.slane %v234_v59, 4  ;;  %v266_v10 = vrot.slane %v235_v60, 4  ;;  %v278_v13 = vrot.slane %v237_v62, 4  ;;  %v284_v14 = vrot.slane %v238_v63, 4 }
  0x31   :  { %v249_v16 = vadd.f32 %v248_v7, %v232_v56  ;;  %v255_v17 = vadd.f32 %v254_v8, %v233_v58  ;;  %v273_v27 = vadd.f32 %v272_v12, %v236_v61  ;;  %v290_v28 = vrot.slane %v239_v4, 4 }
  0x32   :  { %v261_v18 = vadd.f32 %v260_v9, %v234_v59  ;;  %v267_v26 = vadd.f32 %v266_v10, %v235_v60  ;;  %v146_v29 = vadd.f32 %v145_v1, %v1520_v53  ;;  %v279_v35 = vadd.f32 %v278_v13, %v237_v62 }
  0x33   :  { %v250_v33 = vrot.slane %v249_v16, 2  ;;  %v256_v34 = vrot.slane %v255_v17, 2  ;;  %v285_v37 = vadd.f32 %v284_v14, %v238_v63  ;;  %v152_v45 = vadd.f32 %v151_v2, %v1522_v54 }
  0x34   :  { %v262_v36 = vrot.slane %v261_v18, 2  ;;  %v170_v46 = vadd.f32 %v169_v3, %v1524_v55  ;;  %v268_v48 = vrot.slane %v267_v26, 2  ;;  %v176_v49 = vadd.f32 %v175_v6, %v1526_v57 }
  0x35   :  { %v251_v47 = vadd.f32 %v250_v33, %v249_v16  ;;  %v182_v50 = vadd.f32 %v181_v15, %v1528_v0  ;;  %v274_v51 = vrot.slane %v273_v27, 2  ;;  %v291_v52 = vadd.f32 %v290_v28, %v239_v4 }
  0x36   :  { %v147_v56 = vrot.slane %v146_v29, 2  ;;  %v188_v58 = vadd.f32 %v187_v22, %v1533_v5  ;;  %v257_v59 = vadd.f32 %v256_v34, %v255_v17  ;;  %v280_v60 = vrot.slane %v279_v35, 2 }
  0x37   :  { %v263_v61 = vadd.f32 %v262_v36, %v261_v18  ;;  %v286_v62 = vrot.slane %v285_v37, 2  ;;  %v153_v63 = vrot.slane %v152_v45, 2  ;;  %v171_v1 = vrot.slane %v170_v46, 2 }
  0x38   :  { %v252_v2 = vrot.slane %v251_v47, 1  ;;  %v269_v7 = vadd.f32 %v268_v48, %v267_v26  ;;  %v177_v3 = vrot.slane %v176_v49, 2  ;;  %v183_v8 = vrot.slane %v182_v50, 2 }
  0x39   :  { %v275_v9 = vadd.f32 %v274_v51, %v273_v27  ;;  %v292_v10 = vrot.slane %v291_v52, 2  ;;  %v148_v6 = vadd.f32 %v147_v56, %v146_v29  ;;  %v189_v12 = vrot.slane %v188_v58, 2 }
  0x3a   :  { %v258_v13 = vrot.slane %v257_v59, 1  ;;  %v281_v14 = vadd.f32 %v280_v60, %v279_v35  ;;  %v264_v4 = vrot.slane %v263_v61, 1  ;;  %v287_v15 = vadd.f32 %v286_v62, %v285_v37 }
  0x3b   :  { %v154_v16 = vadd.f32 %v153_v63, %v152_v45  ;;  %v172_v22 = vadd.f32 %v171_v1, %v170_v46  ;;  %v253_v17 = vadd.f32 %v252_v2, %v251_v47  ;;  %v270_v28 = vrot.slane %v269_v7, 1 }
  0x3c   :  { %v178_v18 = vadd.f32 %v177_v3, %v176_v49  ;;  %v184_v33 = vadd.f32 %v183_v8, %v182_v50  ;;  %v276_v34 = vrot.slane %v275_v9, 1  ;;  %v293_v36 = vadd.f32 %v292_v10, %v291_v52 }
  0x3d   :  { %v149_v25 = vrot.slane %v148_v6, 1  ;;  %v190_v26 = vadd.f32 %v189_v12, %v188_v58  ;;  %v259_v48 = vadd.f32 %v258_v13, %v257_v59  ;;  %v282_v31 = vrot.slane %v281_v14, 1 }
  0x3e   :  { %v265_v27 = vadd.f32 %v264_v4, %v263_v61  ;;  %v288_v51 = vrot.slane %v287_v15, 1  ;;  %v155_v29 = vrot.slane %v154_v16, 1  ;;  %v173_v56 = vrot.slane %v172_v22, 1 }
  0x3f   :  { %v271_v24 = vadd.f32 %v270_v28, %v269_v7  ;;  %v344_v35 = vmul.f32 %v253_v17, %v1478_v32  ;;  %v179_v37 = vrot.slane %v178_v18, 1  ;;  %v185_v45 = vrot.slane %v184_v33, 1 }
  0x40   :  { %v277_v46 = vadd.f32 %v276_v34, %v275_v9  ;;  %v294_v47 = vrot.slane %v293_v36, 1  ;;  %v150_v60 = vadd.f32 %v149_v25, %v148_v6  ;;  %v191_v49 = vrot.slane %v190_v26, 1 }
  0x41   :  { %v283_v50 = vadd.f32 %v282_v31, %v281_v14  ;;  %v345_v52 = vmul.f32 %v259_v48, %v1478_v32  ;;  %v289_v62 = vadd.f32 %v288_v51, %v287_v15  ;;  %v346_v58 = vmul.f32 %v265_v27, %v1478_v32 }
  0x42   :  { %v156_v59 = vadd.f32 %v155_v29, %v154_v16  ;;  %v174_v61 = vadd.f32 %v173_v56, %v172_v22  ;;  %v347_v63 = vmul.f32 %v271_v24, %v1478_v32  ;;  %v1548_v1 = vadd.f32 1e-05, %v344_v35 }
  0x43   :  { %v180_v2 = vadd.f32 %v179_v37, %v178_v18  ;;  %v186_v7 = vadd.f32 %v185_v45, %v184_v33  ;;  %v295_v3 = vadd.f32 %v294_v47, %v293_v36  ;;  %v348_v8 = vmul.f32 %v277_v46, %v1478_v32 }
  0x44   :  { %v192_v9 = vadd.f32 %v191_v49, %v190_v26  ;;  %v1552_v25 = vmul.f32 %v1478_v32, %v150_v60  ;;  %v349_v31 = vmul.f32 %v283_v50, %v1478_v32  ;;  %v1555_v10 = vadd.f32 1e-05, %v345_v52 }
  0x45   :  { %v350_v6 = vmul.f32 %v289_v62, %v1478_v32  ;;  %v1558_v12 = vadd.f32 1e-05, %v346_v58  ;;  %v1561_v24 = vmul.f32 %v1478_v32, %v156_v59  ;;  %v1564_v13 = vmul.f32 %v1478_v32, %v174_v61 }
  0x46   :  { %v1566_v14 = vadd.f32 1e-05, %v347_v63  ;;  %1218 = vrsqrt.f32 %v1548_v1  ;;  %v1570_v4 = vmul.f32 %v1478_v32, %v180_v2  ;;  %v1573_v15 = vmul.f32 %v1478_v32, %v186_v7 }
  0x47   :  { %v351_v16 = vmul.f32 %v295_v3, %v1478_v32  ;;  %v1576_v22 = vadd.f32 1e-05, %v348_v8  ;;  %v1579_v17 = vmul.f32 %v1478_v32, %v192_v9  ;;  %v224_v28 = vsub.f32 %v1520_v53, %v1552_v25 }
  0x48   :  { %v1583_v18 = vadd.f32 1e-05, %v349_v31  ;;  %1220 = vrsqrt.f32 %v1555_v10  ;;  %v1586_v33 = vadd.f32 1e-05, %v350_v6  ;;  %v225_v34 = vsub.f32 %v1522_v54, %v1561_v24 }
  0x49   :  { %1222 = vrsqrt.f32 %v1558_v12  ;;  %v228_v36 = vsub.f32 %v1524_v55, %v1564_v13  ;;  %v229_v26 = vsub.f32 %v1526_v57, %v1570_v4  ;;  %v230_v53 = vsub.f32 %v1528_v0, %v1573_v15 }
  0x4a   :  { %1224 = vrsqrt.f32 %v1566_v14  ;;  %v1598_v48 = vadd.f32 1e-05, %v351_v16  ;;  %v231_v54 = vsub.f32 %v1533_v5, %v1579_v17  ;;  %v1605_v51 = vmul.f32 %v224_v28, %v224_v28 }
  0x4b   :  { %1226 = vrsqrt.f32 %v1576_v22  ;;  %v1613_v0 = vmul.f32 %v225_v34, %v225_v34  ;;  %v1615_v29 = vmul.f32 %v228_v36, %v228_v36  ;;  %v1619_v35 = vmul.f32 %v229_v26, %v229_v26 }
  0x4c   :  { %v1601_v27 = vpop.eup %1218  ;;  %1228 = vrsqrt.f32 %v1583_v18  ;;  %v1621_v5 = vmul.f32 %v230_v53, %v230_v53  ;;  %v1628_v46 = vmul.f32 %v231_v54, %v231_v54  ;;  %v296_v47 = vrot.slane %v1605_v51, 4 }
  0x4d   :  { %v379_v55 = vmul.f32 %v1601_v27, %v1548_v1  ;;  %1230 = vrsqrt.f32 %v1586_v33  ;;  %vm394_vm1 = vweird.f32 %v1555_v10  ;;  %vm404_vm2 = vweird.f32 %v1558_v12 }
  0x4e   :  { %v1611_v57 = vpop.eup %1220  ;;  %1232 = vrsqrt.f32 %v1598_v48  ;;  %vm414_vm3 = vweird.f32 %v1566_v14  ;;  %vm424_vm4 = vweird.f32 %v1576_v22  ;;  %vm384_vm5 = vweird.f32 %v1548_v1 }
  0x4f   :  { %v1617_v56 = vpop.eup %1222  ;;  %v389_v37 = vmul.f32 %v1611_v57, %v1555_v10  ;;  %v380_v50 = vmul.f32 %v1601_v27, %v379_v55  ;;  %vm434_vm6 = vweird.f32 %v1583_v18  ;;  %vm395_vm7 = vweird.f32 %v1611_v57 }
  0x50   :  { %v1626_v45 = vpop.eup %1224  ;;  %v399_v60 = vmul.f32 %v1617_v56, %v1558_v12  ;;  %vm405_vm8 = vweird.f32 %v1617_v56  ;;  %vm444_vm10 = vweird.f32 %v1586_v33  ;;  %vm1670_vm11 = vmor %vm394_vm1, %vm395_vm7  ;;  %vm385_vm1 = vweird.f32 %v1601_v27 }
  0x51   :  { %v1634_v49 = vpop.eup %1226  ;;  %v390_v52 = vmul.f32 %v1611_v57, %v389_v37  ;;  %v409_v62 = vmul.f32 %v1626_v45, %v1566_v14  ;;  %v381_v16 = vmul.f32 0.5, %v380_v50  ;;  %vm415_vm9 = vweird.f32 %v1626_v45  ;;  %vm1681_vm13 = vmor %vm404_vm2, %vm405_vm8 }
  0x52   :  { %v1641_v58 = vpop.eup %1228  ;;  %v400_v59 = vmul.f32 %v1617_v56, %v399_v60  ;;  %v419_v61 = vmul.f32 %v1634_v49, %v1576_v22  ;;  %vm425_vm12 = vweird.f32 %v1634_v49  ;;  %vm1693_vm0 = vmor %vm414_vm3, %vm415_vm9  ;;  %vm454_vm3 = vweird.f32 %v1598_v48 }
  0x53   :  { %v1648_v63 = vpop.eup %1230  ;;  %v391_v2 = vmul.f32 0.5, %v390_v52  ;;  %v410_v7 = vmul.f32 %v1626_v45, %v409_v62  ;;  %v429_v3 = vmul.f32 %v1641_v58, %v1583_v18  ;;  %vm435_vm14 = vweird.f32 %v1641_v58  ;;  %vm1704_vm2 = vmor %vm424_vm4, %vm425_vm12 }
  0x54   :  { %v401_v8 = vmul.f32 0.5, %v400_v59  ;;  %v420_v9 = vmul.f32 %v1634_v49, %v419_v61  ;;  %v439_v31 = vmul.f32 %v1648_v63, %v1586_v33  ;;  %v1659_v6 = vpop.eup %1232  ;;  %v382_v59 = vsub.f32 1.5, %v381_v16  ;;  %vm1714_vm8 = vmor %vm434_vm6, %vm435_vm14 }
  0x55   :  { %v411_v28 = vmul.f32 0.5, %v410_v7  ;;  %v430_v34 = vmul.f32 %v1641_v58, %v429_v3  ;;  %v392_v36 = vsub.f32 1.5, %v391_v2  ;;  %v449_v62 = vmul.f32 %v1659_v6, %v1598_v48  ;;  %vm1735_vm6 = vmor %vm384_vm5, %vm385_vm1 }
  0x56   :  { %v402_v26 = vsub.f32 1.5, %v401_v8  ;;  %v421_v53 = vmul.f32 0.5, %v420_v9  ;;  %v440_v54 = vmul.f32 %v1648_v63, %v439_v31  ;;  %vm445_vm15 = vweird.f32 %v1648_v63  ;;  %v805_v31 = vld [vmem:[#allocation10 + $0x38] sm:$0xff] }
  0x57   :  { %v412_v55 = vsub.f32 1.5, %v411_v28  ;;  %v431_v37 = vmul.f32 0.5, %v430_v34  ;;  %v393_v2 = vmul.f32 %v1611_v57, %v392_v36  ;;  %v450_v8 = vmul.f32 %v1659_v6, %v449_v62  ;;  %vm1726_vm4 = vmor %vm444_vm10, %vm445_vm15  ;;  %1022 = vmatpush.xpose.msrb.mxu3 %v805_v31 }
  0x58   :  { %v422_v50 = vsub.f32 1.5, %v421_v53  ;;  %v441_v52 = vmul.f32 0.5, %v440_v54  ;;  %v403_v7 = vmul.f32 %v1617_v56, %v402_v26  ;;  %vm455_vm7 = vweird.f32 %v1659_v6 }
  0x59   :  { %v432_v10 = vsub.f32 1.5, %v431_v37  ;;  %v413_v9 = vmul.f32 %v1626_v45, %v412_v55  ;;  %v451_v34 = vmul.f32 0.5, %v450_v8  ;;  %v302_v36 = vrot.slane %v1613_v0, 4  ;;  %vm1757_vm5 = vmor %vm454_vm3, %vm455_vm7 }
  0x5a   :  { %v442_v12 = vsub.f32 1.5, %v441_v52  ;;  %v423_v14 = vmul.f32 %v1634_v49, %v422_v50  ;;  %v320_v26 = vrot.slane %v1615_v29, 4  ;;  %v326_v53 = vrot.slane %v1619_v35, 4 }
  0x5b   :  { %v433_v16 = vmul.f32 %v1641_v58, %v432_v10  ;;  %v383_v18 = vmul.f32 %v1601_v27, %v382_v59  ;;  %v397_v37 = vsel %vm1670_vm11, %v1611_v57, %v393_v2  ;;  %v407_v33 = vsel %vm1681_vm13, %v1617_v56, %v403_v7 }
  0x5c   :  { %v443_v22 = vmul.f32 %v1648_v63, %v442_v12  ;;  %v452_v50 = vsub.f32 1.5, %v451_v34  ;;  %v297_v52 = vadd.f32 %v296_v47, %v1605_v51  ;;  %v332_v62 = vrot.slane %v1621_v5, 4 }
  0x5d   :  { %v338_v1 = vrot.slane %v1628_v46, 4  ;;  %v417_v59 = vsel %vm1693_vm0, %v1626_v45, %v413_v9  ;;  %v427_v51 = vsel %vm1704_vm2, %v1634_v49, %v423_v14  ;;  %v437_v56 = vsel %vm1714_vm8, %v1641_v58, %v433_v16 }
  0x5e   :  { %v447_v45 = vsel %vm1726_vm4, %v1648_v63, %v443_v22  ;;  %v453_v47 = vmul.f32 %v1659_v6, %v452_v50  ;;  %v303_v48 = vadd.f32 %v302_v36, %v1613_v0  ;;  %v554_v60 = vrot.slane %v397_v37, 7 }
  0x5f   :  { %v555_v61 = vrot.slane %v407_v33, 6  ;;  %vm568_vm9 = vcmask 1040384   ;;  %v387_v10 = vsel %vm1735_vm6, %v1601_v27, %v383_v18  ;;  %v556_v58 = vrot.slane %v417_v59, 5 }
  0x60   :  { %v457_v49 = vsel %vm1757_vm5, %v1659_v6, %v453_v47  ;;  %vm2047_vm10 = vcmask 1042434   ;;  %v321_v2 = vadd.f32 %v320_v26, %v1615_v29  ;;  %v557_v63 = vrot.slane %v427_v51, 4  ;;  %v803_v6 = vld [vmem:[#allocation10 + $0x28] sm:$0xff]  ;;  %v360_v26 = vld [vmem:[#allocation7] sm:$0xff]  ;;  %v1789_v47 = vld [vmem:[#allocation4 + $0x50] sm:$0xff] }
  0x61   :  { %v558_v7 = vrot.slane %v437_v56, 3  ;;  %v559_v3 = vrot.slane %v447_v45, 2  ;;  %v327_v0 = vadd.f32 %v326_v53, %v1619_v35  ;;  %v560_v12 = vrot.slane %v457_v49, 1  ;;  %982 = vmatpush.xpose.msrb.mxu1 %v803_v6  ;;  %v1791_v49 = vld [vmem:[#allocation4 + $0x58] sm:$0xff] }
  0x62   :  { %vm574_vm11 = vcmask 1044484   ;;  %vm576_vm12 = vcmask 1046534   ;;  %v333_v8 = vadd.f32 %v332_v62, %v1621_v5  ;;  %v569_v27 = vsel %vm568_vm9, %v387_v10, %v554_v60 }
  0x63   :  { %v571_v9 = vsel %vm2047_vm10, %v555_v61, %v556_v58  ;;  %vm2046_vm13 = vcmask 1041408   ;;  %v298_v14 = vrot.slane %v297_v52, 2  ;;  %v339_v29 = vadd.f32 %v338_v1, %v1628_v46 }
  0x64   :  { %v575_v16 = vsel %vm574_vm11, %v557_v63, %v558_v7  ;;  %v577_v35 = vsel %vm576_vm12, %v559_v3, %v560_v12  ;;  %v304_v28 = vrot.slane %v303_v48, 2  ;;  %v322_v22 = vrot.slane %v321_v2, 2 }
  0x65   :  { %v573_v5 = vsel %vm2046_vm13, %v569_v27, %v571_v9  ;;  %v328_v34 = vrot.slane %v327_v0, 2  ;;  %v334_v36 = vrot.slane %v333_v8, 2  ;;  %vm578_vm14 = vcmask 1045508  }
  0x66   :  { %vm2045_vm15 = vcmask 1043456   ;;  %v299_v53 = vadd.f32 %v298_v14, %v297_v52  ;;  %v340_v54 = vrot.slane %v339_v29, 2  ;;  %v579_v18 = vsel %vm578_vm14, %v575_v16, %v577_v35 }
  0x67   :  { %v581_v46 = vsel %vm2045_vm15, %v573_v5, %v579_v18  ;;  %v305_v55 = vadd.f32 %v304_v28, %v303_v48  ;;  %v323_v37 = vadd.f32 %v322_v22, %v321_v2  ;;  %v329_v50 = vadd.f32 %v328_v34, %v327_v0 }
  0x68   :  { %v591_v33 = vmul.f32 %v581_v46, %v360_v26  ;;  %v335_v62 = vadd.f32 %v334_v36, %v333_v8  ;;  %v300_v1 = vrot.slane %v299_v53, 1  ;;  %v341_v59 = vadd.f32 %v340_v54, %v339_v29  ;;  %v596_v46 = vld [vmem:[#allocation9] sm:$0xff] }
  0x69   :  { %v306_v60 = vrot.slane %v305_v55, 1  ;;  %v324_v52 = vrot.slane %v323_v37, 1  ;;  %v330_v58 = vrot.slane %v329_v50, 1  ;;  %v1796_v3 = vstv %s2035_s0 }
  0x6a   :  { %v600_v57 = vperm.slane %v591_v33, 0  ;;  %v601_v51 = vperm.slane %v591_v33, 1  ;;  %v602_v56 = vperm.slane %v591_v33, 2  ;;  %v603_v45 = vperm.slane %v591_v33, 3 }
  0x6b   :  { %v604_v61 = vperm.slane %v591_v33, 4  ;;  %v605_v10 = vperm.slane %v591_v33, 5  ;;  %v336_v48 = vrot.slane %v335_v62, 1  ;;  %v606_v2 = vperm.slane %v591_v33, 6 }
  0x6c   :  { %v607_v63 = vperm.slane %v591_v33, 7  ;;  %v342_v7 = vrot.slane %v341_v59, 1  ;;  %v633_v0 = vmul.f32 %v601_v51, %v1484_v39  ;;  %v157_v12 = vrot.slane %v1789_v47, 4 }
  0x6d   :  { %v632_v8 = vmul.f32 %v600_v57, %v1481_v38  ;;  %v634_v27 = vmul.f32 %v602_v56, %v1487_v40  ;;  %v635_v9 = vmul.f32 %v603_v45, %v1490_v41  ;;  %v163_v6 = vrot.slane %v1791_v49, 4 }
  0x6e   :  { %v636_v31 = vmul.f32 %v604_v61, %v1493_v11  ;;  %v637_v14 = vmul.f32 %v605_v10, %v1496_v42  ;;  %v638_v29 = vmul.f32 %v606_v2, %v1499_v43  ;;  %v639_v16 = vmul.f32 %v607_v63, %v1502_v44 }
  0x6f   :  { %v1809_v39 = vmul.f32 %v1796_v3, %v591_v33  ;;  %v664_v35 = vrot.slane %v633_v0, 7  ;;  %v665_v28 = vrot.slane %v634_v27, 6  ;;  %v666_v38 = vrot.slane %v635_v9, 5 }
  0x70   :  { %v301_v22 = vadd.f32 %v300_v1, %v299_v53  ;;  %v667_v40 = vrot.slane %v636_v31, 4  ;;  %v668_v5 = vrot.slane %v637_v14, 3  ;;  %v669_v41 = vrot.slane %v638_v29, 2 }
  0x71   :  { %v307_v34 = vadd.f32 %v306_v60, %v305_v55  ;;  %v670_v36 = vrot.slane %v639_v16, 1  ;;  %v678_v11 = vsel %vm568_vm9, %v632_v8, %v664_v35  ;;  %v679_v42 = vsel %vm2047_vm10, %v665_v28, %v666_v38  ;;  %v854_v28 = vld [vmem:[#allocation10 + $0x1c0] sm:$0xff]  ;;  %v856_v38 = vld [vmem:[#allocation10 + $0x1d0] sm:$0xff] }
  0x72   :  { %v325_v26 = vadd.f32 %v324_v52, %v323_v37  ;;  %v680_v43 = vsel %vm2046_vm13, %v678_v11, %v679_v42  ;;  %v681_v44 = vsel %vm574_vm11, %v667_v40, %v668_v5  ;;  %v158_v54 = vadd.f32 %v157_v12, %v1789_v47  ;;  %v855_v42 = vld [vmem:[#allocation10 + $0x1c8] sm:$0xff] }
  0x73   :  { %v331_v18 = vadd.f32 %v330_v58, %v329_v50  ;;  %v682_v53 = vsel %vm576_vm12, %v669_v41, %v670_v36  ;;  %v700_v33 = vperm.slane %v1809_v39, 0  ;;  %v164_v55 = vadd.f32 %v163_v6, %v1791_v49  ;;  %v2067_v36 = vld [vmem:[#allocation17_spill] sm:$0xff] }
  0x74   :  { %v683_v1 = vsel %vm578_vm14, %v681_v44, %v682_v53  ;;  %v702_v57 = vperm.slane %v1809_v39, 2  ;;  %v701_v37 = vperm.slane %v1809_v39, 1  ;;  %v703_v51 = vperm.slane %v1809_v39, 3  ;;  %v2069_v53 = vld [vmem:[#allocation18_spill] sm:$0xff] }
  0x75   :  { %v337_v56 = vadd.f32 %v336_v48, %v335_v62  ;;  %v343_v45 = vadd.f32 %v342_v7, %v341_v59  ;;  %v684_v60 = vsel %vm2045_vm15, %v680_v43, %v683_v1  ;;  %v1825_v50 = vmul.f32 %v301_v22, %v1478_v32  ;;  %v840_v1 = vld [vmem:[#allocation10 + $0x150] sm:$0xff] }
  0x76   :  { %v353_v52 = vmul.f32 %v307_v34, %v1478_v32  ;;  %v694_v61 = vsub.f32 %v596_v46, %v684_v60  ;;  %v159_v10 = vrot.slane %v158_v54, 2  ;;  %v356_v58 = vmul.f32 %v325_v26, %v1478_v32  ;;  %v857_v26 = vld [vmem:[#allocation10 + $0x1d8] sm:$0xff] }
  0x77   :  { %v357_v2 = vmul.f32 %v331_v18, %v1478_v32  ;;  %v732_v63 = vmul.f32 %v700_v33, %v1441_v19  ;;  %v165_v0 = vrot.slane %v164_v55, 2  ;;  %v734_v62 = vmul.f32 %v702_v57, %v1445_v21  ;;  %v2068_v46 = vld [vmem:[#allocation19_spill] sm:$0xff] }
  0x78   :  { %v1832_v12 = vmul.f32 %v694_v61, %v1796_v3  ;;  %v733_v59 = vmul.f32 %v701_v37, %v1443_v20  ;;  %v735_v48 = vmul.f32 %v703_v51, %v1448_v23  ;;  %v706_v7 = vperm.slane %v1809_v39, 6  ;;  %v839_v61 = vld [vmem:[#allocation10 + $0x148] sm:$0xff] }
  0x79   :  { %v704_v8 = vperm.slane %v1809_v39, 4  ;;  %v160_v27 = vadd.f32 %v159_v10, %v158_v54  ;;  %v166_v9 = vadd.f32 %v165_v0, %v164_v55  ;;  %v358_v21 = vmul.f32 %v337_v56, %v1478_v32  ;;  %v838_v55 = vld [vmem:[#allocation10 + $0x140] sm:$0xff]  ;;  %v841_v10 = vld [vmem:[#allocation10 + $0x158] sm:$0xff] }
  0x7a   :  { %v750_v6 = vperm.slane %v1832_v12, 0  ;;  %v752_v19 = vperm.slane %v1832_v12, 2  ;;  %v751_v31 = vperm.slane %v1832_v12, 1  ;;  %v753_v14 = vperm.slane %v1832_v12, 3 }
  0x7b   :  { %v1844_v29 = vadd.f32 1e-05, %v356_v58  ;;  %v707_v20 = vperm.slane %v1809_v39, 7  ;;  %v705_v23 = vperm.slane %v1809_v39, 5  ;;  %v359_v5 = vmul.f32 %v343_v45, %v1478_v32 }
  0x7c   :  { %v782_v16 = vadd.f32 %v750_v6, %v732_v63  ;;  %v784_v35 = vadd.f32 %v752_v19, %v734_v62  ;;  %v783_v22 = vadd.f32 %v751_v31, %v733_v59  ;;  %v785_v40 = vadd.f32 %v753_v14, %v735_v48  ;;  %v824_v62 = vld [vmem:[#allocation10 + $0xd0] sm:$0xff]  ;;  %v806_v14 = vld [vmem:[#allocation10 + $0x40] sm:$0xff] }
  0x7d   :  { %v1849_v41 = vadd.f32 1e-05, %v357_v2  ;;  %v738_v34 = vmul.f32 %v706_v7, %v1457_v30  ;;  %v736_v11 = vmul.f32 %v704_v8, %v2067_v36  ;;  %v756_v39 = vperm.slane %v1832_v12, 6  ;;  %v859_v36 = vld [vmem:[#allocation10 + $0x1e8] sm:$0xff] }
  0x7e   :  { %883 = vmatmul.f32.vlgmr.msra.gmra.mxu0 %v782_v16  ;;  %923 = vmatmul.f32.vlgmr.msra.gmra.mxu2 %v784_v35  ;;  %v754_v43 = vperm.slane %v1832_v12, 4  ;;  %v161_v44 = vrot.slane %v160_v27, 1  ;;  %v167_v54 = vrot.slane %v166_v9, 1  ;;  %v1855_v18 = vadd.f32 1e-05, %v358_v21  ;;  %v808_v21 = vld [vmem:[#allocation10 + $0x50] sm:$0xff] }
  0x7f   :  { %1234 = vrsqrt.f32 %v1844_v29  ;;  %1039 = vmatpush.xpose.msra.mxu0 %v854_v28  ;;  %1079 = vmatpush.xpose.msra.mxu2 %v856_v38  ;;  %v739_v30 = vmul.f32 %v707_v20, %v2068_v46  ;;  %v737_v33 = vmul.f32 %v705_v23, %v2069_v53  ;;  %v757_v57 = vperm.slane %v1832_v12, 7  ;;  %v858_v35 = vld [vmem:[#allocation10 + $0x1e0] sm:$0xff]  ;;  %v860_v28 = vld [vmem:[#allocation10 + $0x1f0] sm:$0xff]  ;;  %v807_v38 = vld [vmem:[#allocation10 + $0x48] sm:$0xff] }
  0x80   :  { %903 = vmatmul.f32.vlgmr.msra.gmra.mxu1 %v783_v22  ;;  %943 = vmatmul.f32.vlgmr.msra.gmra.mxu3 %v785_v40  ;;  %v755_v37 = vperm.slane %v1832_v12, 5  ;;  %v162_v51 = vadd.f32 %v161_v44, %v160_v27  ;;  %v168_v56 = vadd.f32 %v167_v54, %v166_v9  ;;  %v1862_v45 = vadd.f32 1e-05, %v353_v52  ;;  %v822_v52 = vld [vmem:[#allocation10 + $0xc0] sm:$0xff]  ;;  %v825_v9 = vld [vmem:[#allocation10 + $0xd8] sm:$0xff] }
  0x81   :  { %v1864_v60 = vadd.f32 1e-05, %v359_v5  ;;  %1236 = vrsqrt.f32 %v1849_v41  ;;  %1059 = vmatpush.xpose.msra.mxu1 %v855_v42  ;;  %1099 = vmatpush.xpose.msra.mxu3 %v857_v26  ;;  %v788_v58 = vadd.f32 %v756_v39, %v738_v34  ;;  %v786_v2 = vadd.f32 %v754_v43, %v736_v11  ;;  %v809_v22 = vld [vmem:[#allocation10 + $0x58] sm:$0xff] }
  0x82   :  { %v1868_v63 = vmul.f32 %v1478_v32, %v162_v51  ;;  %v1871_v0 = vmul.f32 %v1478_v32, %v168_v56  ;;  %v1874_v12 = vadd.f32 1e-05, %v1825_v50  ;;  %1238 = vrsqrt.f32 %v1855_v18  ;;  %v823_v50 = vld [vmem:[#allocation10 + $0xc8] sm:$0xff]  ;;  %v861_v11 = vld [vmem:[#allocation10 + $0x1f8] sm:$0xff] }
  0x83   :  { %1040 = vmatpush.xpose.msra.mxu0 %v838_v55  ;;  %1080 = vmatpush.xpose.msra.mxu2 %v840_v1  ;;  %v789_v59 = vadd.f32 %v757_v57, %v739_v30  ;;  %v787_v48 = vadd.f32 %v755_v37, %v737_v33  ;;  %1240 = vrsqrt.f32 %v1864_v60  ;;  %vm504_vm0 = vweird.f32 %v1844_v29 }
  0x84   :  { %v226_v7 = vsub.f32 %v1789_v47, %v1868_v63  ;;  %v227_v8 = vsub.f32 %v1791_v49, %v1871_v0  ;;  %1242 = vrsqrt.f32 %v1862_v45  ;;  %vm514_vm1 = vweird.f32 %v1849_v41 }
  0x85   :  { %v1881_v27 = vpop.eup %1234  ;;  %1060 = vmatpush.xpose.msra.mxu1 %v839_v61  ;;  %1100 = vmatpush.xpose.msra.mxu3 %v841_v10  ;;  %1244 = vrsqrt.f32 %v1874_v12  ;;  %vm524_vm7 = vweird.f32 %v1855_v18  ;;  %vm534_vm6 = vweird.f32 %v1864_v60  ;;  %vm474_vm15 = vweird.f32 %v1862_v45 }
  0x86   :  { %1003 = vmatmul.f32.vlgmr.msrb.gmra.mxu2 %v788_v58  ;;  %963 = vmatmul.f32.vlgmr.msrb.gmra.mxu0 %v786_v2  ;;  %v242_v6 = vmul.f32 %v226_v7, %v226_v7  ;;  %v243_v19 = vmul.f32 %v227_v8, %v227_v8  ;;  %v499_v43 = vmul.f32 %v1881_v27, %v1844_v29  ;;  %vm505_vm2 = vweird.f32 %v1881_v27 }
  0x87   :  { %v1885_v31 = vpop.eup %1236  ;;  %1041 = vmatpush.xpose.msra.mxu0 %v822_v52  ;;  %1081 = vmatpush.xpose.msra.mxu2 %v824_v62  ;;  %vm1925_vm4 = vmor %vm504_vm0, %vm505_vm2 }
  0x88   :  { %1023 = vmatmul.f32.vlgmr.msrb.gmra.mxu3 %v789_v59  ;;  %983 = vmatmul.f32.vlgmr.msrb.gmra.mxu1 %v787_v48  ;;  %v308_v20 = vrot.slane %v242_v6, 4  ;;  %v314_v23 = vrot.slane %v243_v19, 4  ;;  %v1888_v16 = vpop.eup %1238  ;;  %v509_v44 = vmul.f32 %v1885_v31, %v1849_v41  ;;  %v500_v51 = vmul.f32 %v1881_v27, %v499_v43 }
  0x89   :  { %1061 = vmatpush.xpose.msra.mxu1 %v823_v50  ;;  %1101 = vmatpush.xpose.msra.mxu3 %v825_v9  ;;  %v1890_v34 = vpop.eup %1240  ;;  %v519_v54 = vmul.f32 %v1888_v16, %v1855_v18  ;;  %vm515_vm3 = vweird.f32 %v1885_v31  ;;  %vm525_vm8 = vweird.f32 %v1888_v16  ;;  %v811_v18 = vld [vmem:[#allocation10 + $0x68] sm:$0xff] }
  0x8a   :  { %v309_v40 = vadd.f32 %v308_v20, %v242_v6  ;;  %v315_v5 = vadd.f32 %v314_v23, %v243_v19  ;;  %v1892_v42 = vpop.eup %1242  ;;  %v529_v30 = vmul.f32 %v1890_v34, %v1864_v60  ;;  %v510_v56 = vmul.f32 %v1885_v31, %v509_v44  ;;  %vm1936_vm10 = vmor %vm514_vm1, %vm515_vm3 }
  0x8b   :  { %1042 = vmatpush.xpose.msra.mxu0 %v806_v14  ;;  %1082 = vmatpush.xpose.msra.mxu2 %v808_v21  ;;  %v1900_v46 = vpop.eup %1244  ;;  %v469_v55 = vmul.f32 %v1892_v42, %v1862_v45  ;;  %v520_v61 = vmul.f32 %v1888_v16, %v519_v54  ;;  %v501_v7 = vmul.f32 0.5, %v500_v51  ;;  %vm535_vm5 = vweird.f32 %v1890_v34  ;;  %vm1942_vm0 = vmor %vm524_vm7, %vm525_vm8 }
  0x8c   :  { %v310_v26 = vrot.slane %v309_v40, 2  ;;  %v316_v39 = vrot.slane %v315_v5, 2  ;;  %v459_v37 = vmul.f32 %v1900_v46, %v1874_v12  ;;  %v530_v10 = vmul.f32 %v1890_v34, %v529_v30  ;;  %vm1948_vm2 = vmor %vm534_vm6, %vm535_vm5 }
  0x8d   :  { %1062 = vmatpush.xpose.msra.mxu1 %v807_v38  ;;  %1102 = vmatpush.xpose.msra.mxu3 %v809_v22  ;;  %v470_v52 = vmul.f32 %v1892_v42, %v469_v55  ;;  %v511_v8 = vmul.f32 0.5, %v510_v56  ;;  %v521_v50 = vmul.f32 0.5, %v520_v61  ;;  %v502_v20 = vsub.f32 1.5, %v501_v7 }
  0x8e   :  { %v311_v53 = vadd.f32 %v310_v26, %v309_v40  ;;  %v317_v33 = vadd.f32 %v316_v39, %v315_v5  ;;  %v460_v48 = vmul.f32 %v1900_v46, %v459_v37  ;;  %v531_v9 = vmul.f32 0.5, %v530_v10  ;;  %v842_v10 = vld [vmem:[#allocation10 + $0x160] sm:$0xff] }
  0x8f   :  { %1119 = vmatpush.xpose.msrb.mxu0 %v858_v35  ;;  %1159 = vmatpush.xpose.msrb.mxu2 %v860_v28  ;;  %v471_v14 = vmul.f32 0.5, %v470_v52  ;;  %v522_v23 = vsub.f32 1.5, %v521_v50  ;;  %vm475_vm13 = vweird.f32 %v1892_v42  ;;  %v503_v22 = vmul.f32 %v1881_v27, %v502_v20  ;;  %v828_v50 = vld [vmem:[#allocation10 + $0xf0] sm:$0xff] }
  0x90   :  { %v312_v1 = vrot.slane %v311_v53, 1  ;;  %v318_v57 = vrot.slane %v317_v33, 1  ;;  %v461_v21 = vmul.f32 0.5, %v460_v48  ;;  %v532_v35 = vsub.f32 1.5, %v531_v9  ;;  %vm1953_vm3 = vmor %vm474_vm15, %vm475_vm13 }
  0x91   :  { %1139 = vmatpush.xpose.msrb.mxu1 %v859_v36  ;;  %1179 = vmatpush.xpose.msrb.mxu3 %v861_v11  ;;  %v472_v28 = vsub.f32 1.5, %v471_v14  ;;  %v523_v60 = vmul.f32 %v1888_v16, %v522_v23  ;;  %vm464_vm1 = vweird.f32 %v1874_v12  ;;  %vm465_vm7 = vweird.f32 %v1900_v46  ;;  %v827_v14 = vld [vmem:[#allocation10 + $0xe8] sm:$0xff] }
  0x92   :  { %v313_v58 = vadd.f32 %v312_v1, %v311_v53  ;;  %v319_v2 = vadd.f32 %v318_v57, %v317_v33  ;;  %v462_v38 = vsub.f32 1.5, %v461_v21  ;;  %v533_v45 = vmul.f32 %v1890_v34, %v532_v35  ;;  %v829_v21 = vld [vmem:[#allocation10 + $0xf8] sm:$0xff] }
  0x93   :  { %v473_v26 = vmul.f32 %v1892_v42, %v472_v28  ;;  %v507_v30 = vsel %vm1925_vm4, %v1881_v27, %v503_v22  ;;  %v527_v55 = vsel %vm1942_vm0, %v1888_v16, %v523_v60  ;;  %vm1980_vm4 = vmor %vm464_vm1, %vm465_vm7  ;;  %1120 = vmatpush.xpose.msrb.mxu0 %v842_v10  ;;  %v361_v60 = vld [vmem:[#allocation7 + $0x8] sm:$0xff]  ;;  %vm2086_vm0 = vcmask 1042434  }
  0x94   :  { %v354_v62 = vmul.f32 %v313_v58, %v1478_v32  ;;  %v355_v59 = vmul.f32 %v319_v2, %v1478_v32  ;;  %v512_v32 = vsub.f32 1.5, %v511_v8  ;;  %v463_v54 = vmul.f32 %v1900_v46, %v462_v38  ;;  %v844_v58 = vld [vmem:[#allocation10 + $0x170] sm:$0xff]  ;;  %v826_v8 = vld [vmem:[#allocation10 + $0xe0] sm:$0xff] }
  0x95   :  { %v537_v1 = vsel %vm1948_vm2, %v1890_v34, %v533_v45  ;;  %v477_v37 = vsel %vm1953_vm3, %v1892_v42, %v473_v26  ;;  %v564_v27 = vrot.slane %v507_v30, 4  ;;  %v566_v34 = vrot.slane %v527_v55, 2  ;;  %1160 = vmatpush.xpose.msrb.mxu2 %v844_v58  ;;  %v812_v38 = vld [vmem:[#allocation10 + $0x70] sm:$0xff]  ;;  %vm2089_vm3 = vmmov %vm2086_vm0 }
  0x96   :  { %v372_v6 = vadd.f32 1e-05, %v354_v62  ;;  %v1916_v19 = vadd.f32 1e-05, %v355_v59  ;;  %v513_v5 = vmul.f32 %v1885_v31, %v512_v32  ;;  %v567_v61 = vrot.slane %v537_v1, 1  ;;  %v843_v62 = vld [vmem:[#allocation10 + $0x168] sm:$0xff] }
  0x97   :  { %v845_v59 = vld [vmem:[#allocation10 + $0x178] sm:$0xff]  ;;  %v561_v12 = vrot.slane %v477_v37, 7  ;;  %1140 = vmatpush.xpose.msrb.mxu1 %v843_v62  ;;  %v467_v9 = vsel %vm1980_vm4, %v1900_v46, %v463_v54  ;;  %1121 = vmatpush.xpose.msrb.mxu0 %v826_v8  ;;  %v810_v46 = vld [vmem:[#allocation10 + $0x60] sm:$0xff]  ;;  %vm2087_vm2 = vcmask 1041408   ;;  %vm2088_vm1 = vcmask 1043456  }
  0x98   :  { %1246 = vrsqrt.f32 %v372_v6  ;;  %v517_v33 = vsel %vm1936_vm10, %v1885_v31, %v513_v5  ;;  %vm484_vm13 = vweird.f32 %v372_v6  ;;  %vm494_vm10 = vweird.f32 %v1916_v19  ;;  %1180 = vmatpush.xpose.msrb.mxu3 %v845_v59  ;;  %v813_v5 = vld [vmem:[#allocation10 + $0x78] sm:$0xff]  ;;  %vm2090_vm7 = vmmov %vm2087_vm2 }
  0x99   :  { %1248 = vrsqrt.f32 %v1916_v19  ;;  %v565_v16 = vrot.slane %v517_v33, 3  ;;  %v586_v32 = vsel %vm576_vm12, %v566_v34, %v567_v61  ;;  %1161 = vmatpush.xpose.msrb.mxu2 %v828_v50  ;;  %v582_v28 = vsel %vm568_vm9, %v467_v9, %v561_v12  ;;  %v1250_v50 = vld [vmem:[#allocation4 + $0x40] sm:$0xff] }
  0x9b   :  { %v585_v20 = vsel %vm574_vm11, %v564_v27, %v565_v16  ;;  %1141 = vmatpush.xpose.msrb.mxu1 %v827_v14  ;;  %1122 = vmatpush.xpose.msrb.mxu0 %v810_v46  ;;  %v1251_v14 = vld [vmem:[#allocation4 + $0x48] sm:$0xff] }
  0x9c   :  { %1181 = vmatpush.xpose.msrb.mxu3 %v829_v21  ;;  %v587_v22 = vsel %vm578_vm14, %v585_v20, %v586_v32 }
  0x9d   :  { %1162 = vmatpush.xpose.msrb.mxu2 %v812_v38 }
  0x9e   :  { %v1247_v40 = vpop.eup %1246 }
  0x9f   :  { %v1249_v11 = vpop.eup %1248  ;;  %v479_v39 = vmul.f32 %v1247_v40, %v372_v6  ;;  %vm485_vm15 = vweird.f32 %v1247_v40  ;;  %1142 = vmatpush.xpose.msrb.mxu1 %v811_v18 }
  0xa0   :  { %v489_v44 = vmul.f32 %v1249_v11, %v1916_v19  ;;  %vm495_vm8 = vweird.f32 %v1249_v11  ;;  %vm1984_vm6 = vmor %vm484_vm13, %vm485_vm15  ;;  %1182 = vmatpush.xpose.msrb.mxu3 %v813_v5  ;;  %v1252_v5 = vld [vmem:[#allocation4 + $0x60] sm:$0xff] }
  0xa1   :  { %v480_v53 = vmul.f32 %v1247_v40, %v479_v39  ;;  %vm1991_vm5 = vmor %vm494_vm10, %vm495_vm8 }
  0xa2   :  { %v490_v57 = vmul.f32 %v1249_v11, %v489_v44  ;;  %vm2091_vm13 = vmmov %vm2088_vm1 }
  0xa3   :  { %v481_v51 = vmul.f32 0.5, %v480_v53 }
  0xa4   :  { %v491_v56 = vmul.f32 0.5, %v490_v57 }
  0xa5   :  { %v482_v42 = vsub.f32 1.5, %v481_v51 }
  0xa6   :  { %v492_v52 = vsub.f32 1.5, %v491_v56 }
  0xa7   :  { %v483_v48 = vmul.f32 %v1247_v40, %v482_v42 }
  0xa8   :  { %v493_v6 = vmul.f32 %v1249_v11, %v492_v52 }
  0xa9   :  { %v487_v19 = vsel %vm1984_vm6, %v1247_v40, %v483_v48 }
  0xaa   :  { %v497_v23 = vsel %vm1991_vm5, %v1249_v11, %v493_v6  ;;  %v562_v35 = vrot.slane %v487_v19, 6 }
  0xab   :  { %v563_v29 = vrot.slane %v497_v23, 5 }
  0xad   :  { %v583_v40 = vsel %vm2086_vm0, %v562_v35, %v563_v29 }
  0xae   :  { %v584_v36 = vsel %vm2087_vm2, %v582_v28, %v583_v40 }
  0xaf   :  { %v588_v45 = vsel %vm2088_vm1, %v584_v36, %v587_v22 }
  0xb0   :  { %v592_v11 = vmul.f32 %v588_v45, %v361_v60 }
  0xb2   :  { %v608_v26 = vperm.slane %v592_v11, 0  ;;  %v609_v41 = vperm.slane %v592_v11, 1  ;;  %v610_v39 = vperm.slane %v592_v11, 2  ;;  %v611_v43 = vperm.slane %v592_v11, 3 }
  0xb3   :  { %v612_v44 = vperm.slane %v592_v11, 4  ;;  %v613_v54 = vperm.slane %v592_v11, 5  ;;  %v614_v30 = vperm.slane %v592_v11, 6  ;;  %v615_v53 = vperm.slane %v592_v11, 7 }
  0xb4   :  { %v640_v33 = vmul.f32 %v608_v26, %v1552_v25  ;;  %v641_v55 = vmul.f32 %v609_v41, %v1561_v24  ;;  %v642_v1 = vmul.f32 %v610_v39, %v1868_v63  ;;  %v643_v57 = vmul.f32 %v611_v43, %v1871_v0  ;;  %v1255_v39 = vld [vmem:[#allocation4 + $0x78] sm:$0xff] }
  0xb5   :  { %v644_v37 = vmul.f32 %v612_v44, %v1564_v13  ;;  %v645_v51 = vmul.f32 %v613_v54, %v1570_v4  ;;  %v646_v27 = vmul.f32 %v614_v30, %v1573_v15  ;;  %v595_v56 = vmul.f32 %v1796_v3, %v592_v11  ;;  %v597_v4 = vld [vmem:[#allocation9 + $0x8] sm:$0xff]  ;;  %v1254_v11 = vld [vmem:[#allocation4 + $0x68] sm:$0xff] }
  0xb6   :  { %v647_v31 = vmul.f32 %v615_v53, %v1579_v17  ;;  %v671_v16 = vrot.slane %v641_v55, 7  ;;  %v672_v34 = vrot.slane %v642_v1, 6  ;;  %v673_v61 = vrot.slane %v643_v57, 5  ;;  %v862_v55 = vld [vmem:[%s2040_s5] sm:$0x1]  ;;  %s1391_s5 = smov [#allocation12]  }
  0xb7   :  { %v674_v25 = vrot.slane %v644_v37, 4  ;;  %v675_v42 = vrot.slane %v645_v51, 3  ;;  %v676_v24 = vrot.slane %v646_v27, 2  ;;  %v710_v2 = vperm.slane %v595_v56, 2  ;;  %s1194_s18 = sshll.u32 %s1391_s5, 4  ;;  %s1195_s18 = int_to_ptr.vmem [resolvable:$true] %s1194_s18 }
  0xb8   :  { %v677_v10 = vrot.slane %v647_v31, 1  ;;  %v685_v63 = vsel %vm568_vm9, %v640_v33, %v671_v16  ;;  %v686_v0 = vsel %vm2089_vm3, %v672_v34, %v673_v61  ;;  %v708_v52 = vperm.slane %v595_v56, 0 }
  0xb9   :  { %v688_v13 = vsel %vm574_vm11, %v674_v25, %v675_v42  ;;  %v687_v15 = vsel %vm2090_vm7, %v685_v63, %v686_v0  ;;  %v711_v62 = vperm.slane %v595_v56, 3  ;;  %v709_v59 = vperm.slane %v595_v56, 1 }
  0xba   :  { %v689_v58 = vsel %vm576_vm12, %v676_v24, %v677_v10  ;;  %v742_v7 = vmul.f32 %v710_v2, %v1789_v47  ;;  %v740_v9 = vmul.f32 %v1250_v50, %v708_v52  ;;  %v712_v20 = vperm.slane %v595_v56, 4 }
  0xbb   :  { %v690_v17 = vsel %vm578_vm14, %v688_v13, %v689_v58  ;;  %v743_v6 = vmul.f32 %v711_v62, %v1791_v49  ;;  %v741_v21 = vmul.f32 %v1251_v14, %v709_v59  ;;  %v714_v32 = vperm.slane %v595_v56, 6  ;;  %v1253_v49 = vld [vmem:[#allocation4 + $0x70] sm:$0xff] }
  0xbc   :  { %v691_v12 = vsel %vm2091_vm13, %v687_v15, %v690_v17  ;;  %v713_v29 = vperm.slane %v595_v56, 5  ;;  %v715_v46 = vperm.slane %v595_v56, 7  ;;  %v744_v60 = vmul.f32 %v1252_v5, %v712_v20 }
  0xbd   :  { %v695_v48 = vsub.f32 %v597_v4, %v691_v12  ;;  %v746_v36 = vmul.f32 %v1253_v49, %v714_v32  ;;  %v863_v1 = vmul.f32 %v862_v55, %v1796_v3  ;;  %vm1187_vm9 = vcmask 261120  }
  0xbe   :  { %v745_v26 = vmul.f32 %v1254_v11, %v713_v29  ;;  %v747_v43 = vmul.f32 %v1255_v39, %v715_v46 }
  0xbf   :  { %v697_v8 = vmul.f32 %v695_v48, %v1796_v3  ;;  %v865_v57 = vperm.slane %v863_v1, 0 }
  0xc1   :  { %v760_v19 = vperm.slane %v697_v8, 2  ;;  %v758_v23 = vperm.slane %v697_v8, 0  ;;  %v761_v35 = vperm.slane %v697_v8, 3  ;;  %v759_v28 = vperm.slane %v697_v8, 1 }
  0xc2   :  { %v762_v40 = vperm.slane %v697_v8, 4  ;;  %v764_v45 = vperm.slane %v697_v8, 6  ;;  %v763_v41 = vperm.slane %v697_v8, 5  ;;  %v765_v44 = vperm.slane %v697_v8, 7 }
  0xc3   :  { %v792_v38 = vadd.f32 %v760_v19, %v742_v7  ;;  %v790_v22 = vadd.f32 %v758_v23, %v740_v9  ;;  %v793_v18 = vadd.f32 %v761_v35, %v743_v6  ;;  %v791_v47 = vadd.f32 %v759_v28, %v741_v21 }
  0xc4   :  { %v794_v54 = vadd.f32 %v762_v40, %v744_v60  ;;  %v796_v30 = vadd.f32 %v764_v45, %v746_v36  ;;  %v795_v53 = vadd.f32 %v763_v41, %v745_v26  ;;  %v797_v33 = vadd.f32 %v765_v44, %v747_v43 }
  0xc5   :  { %1083 = vmatmul.f32.vlgmr.msra.gmra.mxu2 %v792_v38  ;;  %1043 = vmatmul.f32.vlgmr.msra.gmra.mxu0 %v790_v22 }
  0xc6   :  { %1103 = vmatmul.f32.vlgmr.msra.gmra.mxu3 %v793_v18  ;;  %1063 = vmatmul.f32.vlgmr.msra.gmra.mxu1 %v791_v47 }
  0xcd   :  { %1123 = vmatmul.f32.vlgmr.msrb.gmra.mxu0 %v794_v54  ;;  %1163 = vmatmul.f32.vlgmr.msrb.gmra.mxu2 %v796_v30 }
  0xce   :  { %1143 = vmatmul.f32.vlgmr.msrb.gmra.mxu1 %v795_v53  ;;  %1183 = vmatmul.f32.vlgmr.msrb.gmra.mxu3 %v797_v33 }
  0xfb   :  { %v884_v37 = vpop.f32.mrf.mxu0 }
  0xfc   :  { %v885_v51 = vadd.f32 %v884_v37, %v865_v57 }
  0xfd   :  { %v904_v27 = vpop.f32.mrf.mxu1 }
  0xfe   :  { %v905_v56 = vadd.f32 %v904_v27, %v885_v51 }
 0x101   :  { %v924_v31 = vpop.f32.mrf.mxu2 }
 0x102   :  { %v925_v16 = vadd.f32 %v924_v31, %v905_v56 }
 0x103   :  { %v944_v34 = vpop.f32.mrf.mxu3  ;;  %v964_v25 = vpop.f32.mrf.mxu0 }
 0x104   :  { %v945_v61 = vadd.f32 %v944_v34, %v925_v16 }
 0x105   :  { %v984_v24 = vpop.f32.mrf.mxu1 }
 0x106   :  { %v965_v42 = vadd.f32 %v964_v25, %v945_v61 }
 0x108   :  { %v985_v10 = vadd.f32 %v984_v24, %v965_v42 }
 0x109   :  { %v1004_v63 = vpop.f32.mrf.mxu2 }
 0x10a   :  { %v1005_v0 = vadd.f32 %v1004_v63, %v985_v10 }
 0x10b   :  { %v1024_v13 = vpop.f32.mrf.mxu3 }
 0x10c   :  { %v1025_v4 = vadd.f32 %v1024_v13, %v1005_v0 }
 0x142   :  { %v1044_v15 = vpop.f32.mrf.mxu0 }
 0x143   :  { %v1045_v58 = vadd.f32 %v1044_v15, %v1025_v4  ;;  %v1064_v3 = vpop.f32.mrf.mxu1 }
 0x145   :  { %v1065_v2 = vadd.f32 %v1064_v3, %v1045_v58 }
 0x148   :  { %v1084_v17 = vpop.f32.mrf.mxu2 }
 0x149   :  { %v1085_v52 = vadd.f32 %v1084_v17, %v1065_v2  ;;  %v1104_v62 = vpop.f32.mrf.mxu3 }
 0x14a   :  { %v1124_v59 = vpop.f32.mrf.mxu0 }
 0x14b   :  { %v1105_v12 = vadd.f32 %v1104_v62, %v1085_v52  ;;  %v1144_v48 = vpop.f32.mrf.mxu1 }
 0x14d   :  { %v1125_v7 = vadd.f32 %v1124_v59, %v1105_v12 }
 0x14f   :  { %v1145_v8 = vadd.f32 %v1144_v48, %v1125_v7 }
 0x150   :  { %v1164_v50 = vpop.f32.mrf.mxu2 }
 0x151   :  { %v1165_v9 = vadd.f32 %v1164_v50, %v1145_v8  ;;  %v1184_v6 = vpop.f32.mrf.mxu3 }
 0x153   :  { %v1185_v14 = vadd.f32 %v1184_v6, %v1165_v9 }
 0x155   :  { %1188 = vst.msk [vmem:[#allocation12] sm:$0xff] %vm1187_vm9, %v1185_v14 }
 0x156   :  { %1199 = dma.vmem_to_hbm [thread:$0]  %s1195_s18, 128, %s1197_s21, [#allocation6]  }
 0x157   :  { %1382 = dma.done.wait [#allocation6], 128  }
 0x158   :  { %1383 = vsyncadd [#allocation6], 4294967168 }
 0x159   :  { %1204 = vsyncpa [#allocation5], 1 }
 0x15a   :  { %1205 = vsyncpa [#allocation8], 1 }
 0x15b   :  { %1206 = vsyncpa [#allocation11], 1 }
 0x15c   :  { %1207 = vsyncpa [#allocation6], 1 }

</bundles_post_ra>
